<compile_context>
chip_gen: v7x
topology: tpu7x:2x2x1
jax: 0.10.0
libtpu: 0.0.40
codegen_flags: <defaults>
</compile_context>

<pallas_src>
import jax
import jax.numpy as jnp
from jax.experimental import pallas as pl
from jax.experimental.pallas import tpu as pltpu


# ----------------------------------------------------------------------------
# DFT factor matrices (built once in the wrapper, resident constants in-kernel)
#   fftshift(fft2(X))         == A_H @ X @ A_W
#   real(ifft2(ifftshift(Z))) == real(B_H @ Z @ B_W)
# (torch.fft.fftshift with no dim also rolls the batch axis, but that roll is
#  exactly undone by the trailing ifftshift since the mask is batch-constant.)
# ----------------------------------------------------------------------------
def _dft_factors(h, w):
    eye_h = jnp.eye(h, dtype=jnp.complex64)
    eye_w = jnp.eye(w, dtype=jnp.complex64)
    a_h = jnp.fft.fftshift(jnp.fft.fft(eye_h, axis=0), axes=0)          # (H,H)
    a_w = jnp.fft.fftshift(jnp.fft.fft(eye_w, axis=0), axes=0).T        # (W,W)
    b_h = jnp.fft.ifft(jnp.fft.ifftshift(eye_h, axes=0), axis=0)        # (H,H)
    b_w = jnp.fft.ifft(jnp.fft.ifftshift(eye_w, axes=0), axis=0).T      # (W,W)

    def ri(m):
        return jnp.real(m).astype(jnp.float32), jnp.imag(m).astype(jnp.float32)

    ahr, ahi = ri(a_h)
    awr, awi = ri(a_w)
    bhr, bhi = ri(b_h)
    bwr, bwi = ri(b_w)
    return ahr, ahi, awr, awi, bhr, bhi, bwr, bwi


# ----------------------------------------------------------------------------
# Kernel 1: amplitude-swapped reconstruction for one batch tile.
#   new_img = real(ifft2(ifftshift(new_amp * exp(i*src_phase))))
# W-side DFTs: single big-M 2-D matmuls (batch folded into M).
# H-side DFTs: per-image 2-D matmuls against the resident (H,H) factors
#              (no broadcast copies, no batched dot_general).
# Emits per-tile min/max partials into lane-dense (1,8,128) blocks.
# ----------------------------------------------------------------------------
def _fourier_mix_kernel(x_ref, mask_ref,
                        ahr_ref, ahi_ref, awr_ref, awi_ref,
                        bhr_ref, bhi_ref, bwr_ref, bwi_ref,
                        img_ref, min_ref, max_ref,
                        qre_ref, qim_ref):
    two, bt, h, w = x_ref.shape
    n = two * bt                       # stacked: [0,bt) = source, [bt,2bt) = target

    # ---- forward W-side (right multiply) for all stacked images at once ----
    # (n*h, w) @ (w, w): M = 2*bt*h keeps the MXU full.  h % 8 == 0 -> the
    # leading-dim merges/splits below are layout no-ops.
    xs = x_ref[...].reshape(n * h, w)
    p_re = jnp.dot(xs, awr_ref[...], preferred_element_type=jnp.float32)
    p_im = jnp.dot(xs, awi_ref[...], preferred_element_type=jnp.float32)
    p_re = p_re.reshape(n, h, w)
    p_im = p_im.reshape(n, h, w)

    ahr = ahr_ref[...]
    ahi = ahi_ref[...]
    bhr = bhr_ref[...]
    bhi = bhi_ref[...]
    mask = mask_ref[...] > 0.5          # reused (H,W) boolean, never tiled to (bt,H,W)

    # ---- per-image H-side sandwich: fwd H-DFT, amplitude swap, inv H-DFT ----
    for b in range(bt):
        psr, psi = p_re[b], p_im[b]             # source partial spectrum (h, w)
        ptr, pti = p_re[bt + b], p_im[bt + b]   # target partial spectrum (h, w)

        # forward H-side (left multiply): plain 2-D MXU dots, no broadcasts
        s_re = (jnp.dot(ahr, psr, preferred_element_type=jnp.float32)
                - jnp.dot(ahi, psi, preferred_element_type=jnp.float32))
        s_im = (jnp.dot(ahi, psr, preferred_element_type=jnp.float32)
                + jnp.dot(ahr, psi, preferred_element_type=jnp.float32))
        t_re = (jnp.dot(ahr, ptr, preferred_element_type=jnp.float32)
                - jnp.dot(ahi, pti, preferred_element_type=jnp.float32))
        t_im = (jnp.dot(ahi, ptr, preferred_element_type=jnp.float32)
                + jnp.dot(ahr, pti, preferred_element_type=jnp.float32))

        tar_amp = jnp.sqrt(t_re * t_re + t_im * t_im)
        src_pow = s_re * s_re + s_im * s_im
        src_amp = jnp.sqrt(src_pow)
        new_amp = jnp.where(mask, tar_amp, src_amp)       # (H,W) select, no blend

        # new_amp * exp(i*angle(src)) = new_amp * (sr + i*si) * rsqrt(|src|^2)
        safe = src_pow > 0.0
        scale = new_amp * jax.lax.rsqrt(jnp.where(safe, src_pow, 1.0))
        z_re = jnp.where(safe, s_re * scale, new_amp)     # angle(0)=0 -> exp(i0)=1
        z_im = jnp.where(safe, s_im * scale, 0.0)

        # inverse H-side (left multiply by B_H), stash in VMEM scratch so the
        # inverse W-side can run as one batched big-M matmul below.
        qre_ref[b] = (jnp.dot(bhr, z_re, preferred_element_type=jnp.float32)
                      - jnp.dot(bhi, z_im, preferred_element_type=jnp.float32))
        qim_ref[b] = (jnp.dot(bhi, z_re, preferred_element_type=jnp.float32)
                      + jnp.dot(bhr, z_im, preferred_element_type=jnp.float32))

    # ---- inverse W-side (right multiply), real part only, batched M = bt*h --
    q_re = qre_ref[...].reshape(bt * h, w)
    q_im = qim_ref[...].reshape(bt * h, w)
    new_img = (jnp.dot(q_re, bwr_ref[...], preferred_element_type=jnp.float32)
               - jnp.dot(q_im, bwi_ref[...], preferred_element_type=jnp.float32))

    img_ref[...] = new_img.reshape(bt, h, w)
    min_ref[...] = jnp.full(min_ref.shape, jnp.min(new_img), dtype=jnp.float32)
    max_ref[...] = jnp.full(max_ref.shape, jnp.max(new_img), dtype=jnp.float32)


# ----------------------------------------------------------------------------
# Kernel 2 (HBM-bound): quantize to uint8-like values
# (floor of 255*(x-min)/(max-min)) and emit the per-tile partial SSE vs
# ori and target.  Uses its own (largest fitting) batch tile.
# ----------------------------------------------------------------------------
def _loss_kernel(scalars_ref, img_ref, stacked_ref, sse_ref):
    bt, h, w = img_ref.shape
    imin = scalars_ref[0]       # global min (SMEM scalar)
    s255 = scalars_ref[1]       # 255 / (max - min), guarded in the wrapper

    # numpy .astype('uint8') on non-negative values in [0, 255] == floor
    x = img_ref[...].reshape(bt * h, w)
    q = jnp.clip(jnp.floor((x - imin) * s255), 0.0, 255.0)

    d_o = q - stacked_ref[0].reshape(bt * h, w)     # vs ori
    d_t = q - stacked_ref[1].reshape(bt * h, w)     # vs target
    sse = jnp.sum(d_o * d_o) + jnp.sum(d_t * d_t)
    sse_ref[...] = jnp.full(sse_ref.shape, sse, dtype=jnp.float32)


# ----------------------------------------------------------------------------
# Generation-aware VMEM budgeting + tile selection.
# ----------------------------------------------------------------------------
def _vmem_capacity_bytes():
    try:
        info = pltpu.get_tpu_info()
        cap = int(getattr(info, "vmem_capacity_bytes", 0) or 0)
        if cap > 0:
            return cap
    except Exception:
        pass
    return 64 * 1024 * 1024          # conservative fallback (v7x per-core VMEM)


def _vmem_budget_and_limit():
    cap = _vmem_capacity_bytes()     # 128 MiB on v5e/v6e, 64 MiB on v7x
    limit = max(32 * 1024 * 1024, min(cap - 8 * 1024 * 1024, int(cap * 0.9)))
    budget = int(limit * 0.8)        # headroom for compiler-managed scratch
    return budget, limit


def _largest_divisor_at_most(b, cap):
    bt = max(1, min(b, cap))
    while b % bt:
        bt -= 1
    return bt


def _pick_mix_tile(b, h, w, budget):
    plane = h * w * 4                                  # one f32 (H,W) image plane
    const_bytes = (8 * h * h + h * w) * 4 * 2          # resident DFT factors + mask
    fixed = const_bytes + 16 * plane                   # per-image-loop temporaries
    per_img = 18 * plane                               # blocks(dbl-buf)+spectra+scratch
    cap = max(1, (budget - fixed) // per_img) if budget > fixed else 1
    if b >= 2:
        cap = min(cap, b // 2)         # nt >= 2 so both v7x TensorCores get work
    return _largest_divisor_at_most(b, cap)


def _pick_loss_tile(b, h, w, budget):
    plane = h * w * 4
    per_img = 10 * plane               # img + stacked blocks (dbl-buf) + temporaries
    cap = max(1, budget // per_img)
    return _largest_divisor_at_most(b, cap)


# ----------------------------------------------------------------------------
# Wrapper == Fourier_loss.forward(mask, ori, target)
# ----------------------------------------------------------------------------
def fourier_loss(mask, ori, target):
    ori = jnp.squeeze(ori, axis=1).astype(jnp.float32)      # (B, H, W)
    target = target.astype(jnp.float32)                     # (B, H, W)
    mask = mask.astype(jnp.float32)                         # (H, W)
    b, h, w = ori.shape

    budget, vmem_limit = _vmem_budget_and_limit()
    bt1 = _pick_mix_tile(b, h, w, budget)                   # compute-bound pass
    nt1 = b // bt1
    bt2 = _pick_loss_tile(b, h, w, budget)                  # HBM-bound pass
    nt2 = b // bt2

    stacked = jnp.stack([ori, target], axis=0)              # (2, B, H, W)
    mats = _dft_factors(h, w)   # ahr, ahi, awr, awi, bhr, bhi, bwr, bwi

    cparams = pltpu.CompilerParams(
        dimension_semantics=("parallel",),                  # independent batch tiles
        vmem_limit_bytes=int(vmem_limit))

    stacked_map = lambda i: (0, i, 0, 0)
    img_map = lambda i: (i, 0, 0)
    const2d = lambda i: (0, 0)                              # fetched once, resident
    part_map = lambda i: (i, 0, 0)

    img, mn, mx = pl.pallas_call(
        _fourier_mix_kernel,
        out_shape=(jax.ShapeDtypeStruct((b, h, w), jnp.float32),
                   jax.ShapeDtypeStruct((nt1, 8, 128), jnp.float32),
                   jax.ShapeDtypeStruct((nt1, 8, 128), jnp.float32)),
        grid_spec=pltpu.PrefetchScalarGridSpec(
            num_scalar_prefetch=0,
            grid=(nt1,),
            in_specs=[pl.BlockSpec((2, bt1, h, w), stacked_map),   # stacked ori/target
                      pl.BlockSpec((h, w), const2d)]               # mask
                     + [pl.BlockSpec((h, h), const2d)] * 2         # A_H re/im
                     + [pl.BlockSpec((w, w), const2d)] * 2         # A_W re/im
                     + [pl.BlockSpec((h, h), const2d)] * 2         # B_H re/im
                     + [pl.BlockSpec((w, w), const2d)] * 2,        # B_W re/im
            out_specs=(pl.BlockSpec((bt1, h, w), img_map),
                       pl.BlockSpec((1, 8, 128), part_map),
                       pl.BlockSpec((1, 8, 128), part_map)),
            scratch_shapes=[pltpu.VMEM((bt1, h, w), jnp.float32),
                            pltpu.VMEM((bt1, h, w), jnp.float32)]),
        compiler_params=cparams,
    )(stacked, mask, *mats)

    # Tiny final reductions + guarded scale, done once in JAX.
    imin = jnp.min(mn)
    imax = jnp.max(mx)
    rng = imax - imin
    s255 = 255.0 / jnp.where(rng > 0.0, rng, 1.0)            # guard max == min
    scalars = jnp.stack([imin, s255]).astype(jnp.float32)    # -> SMEM scalars

    sse_parts = pl.pallas_call(
        _loss_kernel,
        out_shape=jax.ShapeDtypeStruct((nt2, 8, 128), jnp.float32),
        grid_spec=pltpu.PrefetchScalarGridSpec(
            num_scalar_prefetch=0,
            grid=(nt2,),
            in_specs=[pl.BlockSpec(memory_space=pltpu.MemorySpace.SMEM),  # [min, 255/range]
                      pl.BlockSpec((bt2, h, w), img_map),
                      pl.BlockSpec((2, bt2, h, w), stacked_map)],
            out_specs=pl.BlockSpec((1, 8, 128), part_map)),
        compiler_params=cparams,
    )(scalars, img, stacked)

    sse = jnp.sum(sse_parts[:, 0, 0])
    # loss = mse(img, ori) + mse(img, target) ; .mean() on a scalar is a no-op
    return sse / jnp.float32(b * h * w)


if __name__ == "__main__":
    key = jax.random.PRNGKey(0)
    B, H, W = 2, 16, 16
    k1, k2 = jax.random.split(key)
    ori = jax.random.uniform(k1, (B, 1, H, W), dtype=jnp.float32) * 255.0
    target = jax.random.uniform(k2, (B, H, W), dtype=jnp.float32) * 255.0

    # deterministic binary low-pass mask on the (shifted) spectrum
    yy, xx = jnp.meshgrid(jnp.arange(H), jnp.arange(W), indexing="ij")
    mask = ((jnp.abs(yy - H // 2) <= H // 4)
            & (jnp.abs(xx - W // 2) <= W // 4)).astype(jnp.float32)

    loss = jax.jit(fourier_loss)(mask, ori, target)
    jax.block_until_ready(loss)
    print("KERNEL_OK")
</pallas_src>

<mosaic_0001>
module attributes {stable_mosaic.version = 11 : i64} {
  func.func @_fourier_mix_kernel(%arg0: i32, %arg1: memref<2x1x16x16xf32, #tpu.memory_space<vmem>>, %arg2: memref<16x16xf32, #tpu.memory_space<vmem>>, %arg3: memref<16x16xf32, #tpu.memory_space<vmem>>, %arg4: memref<16x16xf32, #tpu.memory_space<vmem>>, %arg5: memref<16x16xf32, #tpu.memory_space<vmem>>, %arg6: memref<16x16xf32, #tpu.memory_space<vmem>>, %arg7: memref<16x16xf32, #tpu.memory_space<vmem>>, %arg8: memref<16x16xf32, #tpu.memory_space<vmem>>, %arg9: memref<16x16xf32, #tpu.memory_space<vmem>>, %arg10: memref<16x16xf32, #tpu.memory_space<vmem>>, %arg11: memref<1x16x16xf32, #tpu.memory_space<vmem>>, %arg12: memref<1x8x128xf32, #tpu.memory_space<vmem>>, %arg13: memref<1x8x128xf32, #tpu.memory_space<vmem>>, %arg14: memref<1x16x16xf32, #tpu.memory_space<vmem>>, %arg15: memref<1x16x16xf32, #tpu.memory_space<vmem>>) attributes {dimension_semantics = [#tpu.dimension_semantics<parallel>], iteration_bounds = array<i64: 2>, scalar_prefetch = 0 : i64, scratch_operands = 2 : i64, tpu.core_type = #tpu.core_type<tc>, window_params = [{transform_indices = @transform_0, window_bounds = array<i64: 2, 1, 16, 16>}, {pipeline_mode = #tpu.pipeline_mode<synchronous>, transform_indices = @transform_1, window_bounds = array<i64: 16, 16>}, {pipeline_mode = #tpu.pipeline_mode<synchronous>, transform_indices = @transform_2, window_bounds = array<i64: 16, 16>}, {pipeline_mode = #tpu.pipeline_mode<synchronous>, transform_indices = @transform_3, window_bounds = array<i64: 16, 16>}, {pipeline_mode = #tpu.pipeline_mode<synchronous>, transform_indices = @transform_4, window_bounds = array<i64: 16, 16>}, {pipeline_mode = #tpu.pipeline_mode<synchronous>, transform_indices = @transform_5, window_bounds = array<i64: 16, 16>}, {pipeline_mode = #tpu.pipeline_mode<synchronous>, transform_indices = @transform_6, window_bounds = array<i64: 16, 16>}, {pipeline_mode = #tpu.pipeline_mode<synchronous>, transform_indices = @transform_7, window_bounds = array<i64: 16, 16>}, {pipeline_mode = #tpu.pipeline_mode<synchronous>, transform_indices = @transform_8, window_bounds = array<i64: 16, 16>}, {pipeline_mode = #tpu.pipeline_mode<synchronous>, transform_indices = @transform_9, window_bounds = array<i64: 16, 16>}, {transform_indices = @transform_10, window_bounds = array<i64: 1, 16, 16>}, {transform_indices = @transform_11, window_bounds = array<i64: 1, 8, 128>}, {transform_indices = @transform_12, window_bounds = array<i64: 1, 8, 128>}]} {
    %c0 = arith.constant 0 : index
    %c0_0 = arith.constant 0 : index
    %c0_1 = arith.constant 0 : index
    %c0_2 = arith.constant 0 : index
    %0 = vector.load %arg1[%c0, %c0_0, %c0_1, %c0_2] : memref<2x1x16x16xf32, #tpu.memory_space<vmem>>, vector<2x1x16x16xf32>
    %1 = vector.shape_cast %0 : vector<2x1x16x16xf32> to vector<32x16xf32>
    %c0_3 = arith.constant 0 : index
    %c0_4 = arith.constant 0 : index
    %2 = vector.load %arg5[%c0_3, %c0_4] : memref<16x16xf32, #tpu.memory_space<vmem>>, vector<16x16xf32>
    %cst = arith.constant dense<0.000000e+00> : vector<32x16xf32>
    %3 = tpu.matmul %1, %2, %cst {dimension_numbers = #tpu.dot_dimension_numbers<[1], [0], [0], [1], [0, 0, 1, 1], [], []>} : vector<32x16xf32>, vector<16x16xf32>, vector<32x16xf32> -> vector<32x16xf32>
    %c0_5 = arith.constant 0 : index
    %c0_6 = arith.constant 0 : index
    %4 = vector.load %arg6[%c0_5, %c0_6] : memref<16x16xf32, #tpu.memory_space<vmem>>, vector<16x16xf32>
    %cst_7 = arith.constant dense<0.000000e+00> : vector<32x16xf32>
    %5 = tpu.matmul %1, %4, %cst_7 {dimension_numbers = #tpu.dot_dimension_numbers<[1], [0], [0], [1], [0, 0, 1, 1], [], []>} : vector<32x16xf32>, vector<16x16xf32>, vector<32x16xf32> -> vector<32x16xf32>
    %6 = vector.shape_cast %3 : vector<32x16xf32> to vector<2x16x16xf32>
    %7 = vector.shape_cast %5 : vector<32x16xf32> to vector<2x16x16xf32>
    %c0_8 = arith.constant 0 : index
    %c0_9 = arith.constant 0 : index
    %8 = vector.load %arg3[%c0_8, %c0_9] : memref<16x16xf32, #tpu.memory_space<vmem>>, vector<16x16xf32>
    %c0_10 = arith.constant 0 : index
    %c0_11 = arith.constant 0 : index
    %9 = vector.load %arg4[%c0_10, %c0_11] : memref<16x16xf32, #tpu.memory_space<vmem>>, vector<16x16xf32>
    %c0_12 = arith.constant 0 : index
    %c0_13 = arith.constant 0 : index
    %10 = vector.load %arg7[%c0_12, %c0_13] : memref<16x16xf32, #tpu.memory_space<vmem>>, vector<16x16xf32>
    %c0_14 = arith.constant 0 : index
    %c0_15 = arith.constant 0 : index
    %11 = vector.load %arg8[%c0_14, %c0_15] : memref<16x16xf32, #tpu.memory_space<vmem>>, vector<16x16xf32>
    %c0_16 = arith.constant 0 : index
    %c0_17 = arith.constant 0 : index
    %12 = vector.load %arg2[%c0_16, %c0_17] : memref<16x16xf32, #tpu.memory_space<vmem>>, vector<16x16xf32>
    %cst_18 = arith.constant 5.000000e-01 : f32
    %13 = vector.broadcast %cst_18 : f32 to vector<16x16xf32>
    %14 = arith.cmpf ogt, %12, %13 : vector<16x16xf32>
    %15 = vector.extract_strided_slice %6 {offsets = [0, 0, 0], sizes = [1, 16, 16], strides = [1, 1, 1]} : vector<2x16x16xf32> to vector<1x16x16xf32>
    %16 = vector.shape_cast %15 : vector<1x16x16xf32> to vector<16x16xf32>
    %17 = vector.extract_strided_slice %7 {offsets = [0, 0, 0], sizes = [1, 16, 16], strides = [1, 1, 1]} : vector<2x16x16xf32> to vector<1x16x16xf32>
    %18 = vector.shape_cast %17 : vector<1x16x16xf32> to vector<16x16xf32>
    %19 = vector.extract_strided_slice %6 {offsets = [1, 0, 0], sizes = [1, 16, 16], strides = [1, 1, 1]} : vector<2x16x16xf32> to vector<1x16x16xf32>
    %20 = vector.shape_cast %19 : vector<1x16x16xf32> to vector<16x16xf32>
    %21 = vector.extract_strided_slice %7 {offsets = [1, 0, 0], sizes = [1, 16, 16], strides = [1, 1, 1]} : vector<2x16x16xf32> to vector<1x16x16xf32>
    %22 = vector.shape_cast %21 : vector<1x16x16xf32> to vector<16x16xf32>
    %cst_19 = arith.constant dense<0.000000e+00> : vector<16x16xf32>
    %23 = tpu.matmul %8, %16, %cst_19 {dimension_numbers = #tpu.dot_dimension_numbers<[1], [0], [0], [1], [0, 0, 1, 1], [], []>} : vector<16x16xf32>, vector<16x16xf32>, vector<16x16xf32> -> vector<16x16xf32>
    %cst_20 = arith.constant dense<0.000000e+00> : vector<16x16xf32>
    %24 = tpu.matmul %9, %18, %cst_20 {dimension_numbers = #tpu.dot_dimension_numbers<[1], [0], [0], [1], [0, 0, 1, 1], [], []>} : vector<16x16xf32>, vector<16x16xf32>, vector<16x16xf32> -> vector<16x16xf32>
    %25 = arith.subf %23, %24 : vector<16x16xf32>
    %cst_21 = arith.constant dense<0.000000e+00> : vector<16x16xf32>
    %26 = tpu.matmul %9, %16, %cst_21 {dimension_numbers = #tpu.dot_dimension_numbers<[1], [0], [0], [1], [0, 0, 1, 1], [], []>} : vector<16x16xf32>, vector<16x16xf32>, vector<16x16xf32> -> vector<16x16xf32>
    %cst_22 = arith.constant dense<0.000000e+00> : vector<16x16xf32>
    %27 = tpu.matmul %8, %18, %cst_22 {dimension_numbers = #tpu.dot_dimension_numbers<[1], [0], [0], [1], [0, 0, 1, 1], [], []>} : vector<16x16xf32>, vector<16x16xf32>, vector<16x16xf32> -> vector<16x16xf32>
    %28 = arith.addf %26, %27 : vector<16x16xf32>
    %cst_23 = arith.constant dense<0.000000e+00> : vector<16x16xf32>
    %29 = tpu.matmul %8, %20, %cst_23 {dimension_numbers = #tpu.dot_dimension_numbers<[1], [0], [0], [1], [0, 0, 1, 1], [], []>} : vector<16x16xf32>, vector<16x16xf32>, vector<16x16xf32> -> vector<16x16xf32>
    %cst_24 = arith.constant dense<0.000000e+00> : vector<16x16xf32>
    %30 = tpu.matmul %9, %22, %cst_24 {dimension_numbers = #tpu.dot_dimension_numbers<[1], [0], [0], [1], [0, 0, 1, 1], [], []>} : vector<16x16xf32>, vector<16x16xf32>, vector<16x16xf32> -> vector<16x16xf32>
    %31 = arith.subf %29, %30 : vector<16x16xf32>
    %cst_25 = arith.constant dense<0.000000e+00> : vector<16x16xf32>
    %32 = tpu.matmul %9, %20, %cst_25 {dimension_numbers = #tpu.dot_dimension_numbers<[1], [0], [0], [1], [0, 0, 1, 1], [], []>} : vector<16x16xf32>, vector<16x16xf32>, vector<16x16xf32> -> vector<16x16xf32>
    %cst_26 = arith.constant dense<0.000000e+00> : vector<16x16xf32>
    %33 = tpu.matmul %8, %22, %cst_26 {dimension_numbers = #tpu.dot_dimension_numbers<[1], [0], [0], [1], [0, 0, 1, 1], [], []>} : vector<16x16xf32>, vector<16x16xf32>, vector<16x16xf32> -> vector<16x16xf32>
    %34 = arith.addf %32, %33 : vector<16x16xf32>
    %35 = arith.mulf %31, %31 : vector<16x16xf32>
    %36 = arith.mulf %34, %34 : vector<16x16xf32>
    %37 = arith.addf %35, %36 : vector<16x16xf32>
    %38 = math.sqrt %37 : vector<16x16xf32>
    %39 = arith.mulf %25, %25 : vector<16x16xf32>
    %40 = arith.mulf %28, %28 : vector<16x16xf32>
    %41 = arith.addf %39, %40 : vector<16x16xf32>
    %42 = math.sqrt %41 : vector<16x16xf32>
    %43 = arith.select %14, %38, %42 : vector<16x16xi1>, vector<16x16xf32>
    %cst_27 = arith.constant 0.000000e+00 : f32
    %44 = vector.broadcast %cst_27 : f32 to vector<16x16xf32>
    %45 = arith.cmpf ogt, %41, %44 : vector<16x16xf32>
    %cst_28 = arith.constant 1.000000e+00 : f32
    %46 = vector.broadcast %cst_28 : f32 to vector<16x16xf32>
    %47 = arith.select %45, %41, %46 : vector<16x16xi1>, vector<16x16xf32>
    %48 = math.rsqrt %47 : vector<16x16xf32>
    %49 = arith.mulf %43, %48 : vector<16x16xf32>
    %50 = arith.mulf %25, %49 : vector<16x16xf32>
    %51 = arith.select %45, %50, %43 : vector<16x16xi1>, vector<16x16xf32>
    %52 = arith.mulf %28, %49 : vector<16x16xf32>
    %cst_29 = arith.constant 0.000000e+00 : f32
    %53 = vector.broadcast %cst_29 : f32 to vector<16x16xf32>
    %54 = arith.select %45, %52, %53 : vector<16x16xi1>, vector<16x16xf32>
    %cst_30 = arith.constant dense<0.000000e+00> : vector<16x16xf32>
    %55 = tpu.matmul %10, %51, %cst_30 {dimension_numbers = #tpu.dot_dimension_numbers<[1], [0], [0], [1], [0, 0, 1, 1], [], []>} : vector<16x16xf32>, vector<16x16xf32>, vector<16x16xf32> -> vector<16x16xf32>
    %cst_31 = arith.constant dense<0.000000e+00> : vector<16x16xf32>
    %56 = tpu.matmul %11, %54, %cst_31 {dimension_numbers = #tpu.dot_dimension_numbers<[1], [0], [0], [1], [0, 0, 1, 1], [], []>} : vector<16x16xf32>, vector<16x16xf32>, vector<16x16xf32> -> vector<16x16xf32>
    %57 = arith.subf %55, %56 : vector<16x16xf32>
    %c0_32 = arith.constant 0 : index
    %c0_33 = arith.constant 0 : index
    %c0_34 = arith.constant 0 : index
    %58 = vector.load %arg14[%c0_32, %c0_33, %c0_34] : memref<1x16x16xf32, #tpu.memory_space<vmem>>, vector<1x16x16xf32>
    %59 = vector.shape_cast %58 : vector<1x16x16xf32> to vector<16x16xf32>
    %60 = vector.shape_cast %57 : vector<16x16xf32> to vector<1x16x16xf32>
    tpu.vector_store %arg14[%c0_32, %c0_33, %c0_34], %60 {strides = array<i32>} : memref<1x16x16xf32, #tpu.memory_space<vmem>>, vector<1x16x16xf32>,
    %cst_35 = arith.constant dense<0.000000e+00> : vector<16x16xf32>
    %61 = tpu.matmul %11, %51, %cst_35 {dimension_numbers = #tpu.dot_dimension_numbers<[1], [0], [0], [1], [0, 0, 1, 1], [], []>} : vector<16x16xf32>, vector<16x16xf32>, vector<16x16xf32> -> vector<16x16xf32>
    %cst_36 = arith.constant dense<0.000000e+00> : vector<16x16xf32>
    %62 = tpu.matmul %10, %54, %cst_36 {dimension_numbers = #tpu.dot_dimension_numbers<[1], [0], [0], [1], [0, 0, 1, 1], [], []>} : vector<16x16xf32>, vector<16x16xf32>, vector<16x16xf32> -> vector<16x16xf32>
    %63 = arith.addf %61, %62 : vector<16x16xf32>
    %c0_37 = arith.constant 0 : index
    %c0_38 = arith.constant 0 : index
    %c0_39 = arith.constant 0 : index
    %64 = vector.load %arg15[%c0_37, %c0_38, %c0_39] : memref<1x16x16xf32, #tpu.memory_space<vmem>>, vector<1x16x16xf32>
    %65 = vector.shape_cast %64 : vector<1x16x16xf32> to vector<16x16xf32>
    %66 = vector.shape_cast %63 : vector<16x16xf32> to vector<1x16x16xf32>
    tpu.vector_store %arg15[%c0_37, %c0_38, %c0_39], %66 {strides = array<i32>} : memref<1x16x16xf32, #tpu.memory_space<vmem>>, vector<1x16x16xf32>,
    %c0_40 = arith.constant 0 : index
    %c0_41 = arith.constant 0 : index
    %c0_42 = arith.constant 0 : index
    %67 = vector.load %arg14[%c0_40, %c0_41, %c0_42] : memref<1x16x16xf32, #tpu.memory_space<vmem>>, vector<1x16x16xf32>
    %68 = vector.shape_cast %67 : vector<1x16x16xf32> to vector<16x16xf32>
    %c0_43 = arith.constant 0 : index
    %c0_44 = arith.constant 0 : index
    %c0_45 = arith.constant 0 : index
    %69 = vector.load %arg15[%c0_43, %c0_44, %c0_45] : memref<1x16x16xf32, #tpu.memory_space<vmem>>, vector<1x16x16xf32>
    %70 = vector.shape_cast %69 : vector<1x16x16xf32> to vector<16x16xf32>
    %c0_46 = arith.constant 0 : index
    %c0_47 = arith.constant 0 : index
    %71 = vector.load %arg9[%c0_46, %c0_47] : memref<16x16xf32, #tpu.memory_space<vmem>>, vector<16x16xf32>
    %cst_48 = arith.constant dense<0.000000e+00> : vector<16x16xf32>
    %72 = tpu.matmul %68, %71, %cst_48 {dimension_numbers = #tpu.dot_dimension_numbers<[1], [0], [0], [1], [0, 0, 1, 1], [], []>} : vector<16x16xf32>, vector<16x16xf32>, vector<16x16xf32> -> vector<16x16xf32>
    %c0_49 = arith.constant 0 : index
    %c0_50 = arith.constant 0 : index
    %73 = vector.load %arg10[%c0_49, %c0_50] : memref<16x16xf32, #tpu.memory_space<vmem>>, vector<16x16xf32>
    %cst_51 = arith.constant dense<0.000000e+00> : vector<16x16xf32>
    %74 = tpu.matmul %70, %73, %cst_51 {dimension_numbers = #tpu.dot_dimension_numbers<[1], [0], [0], [1], [0, 0, 1, 1], [], []>} : vector<16x16xf32>, vector<16x16xf32>, vector<16x16xf32> -> vector<16x16xf32>
    %75 = arith.subf %72, %74 : vector<16x16xf32>
    %76 = vector.shape_cast %75 : vector<16x16xf32> to vector<1x16x16xf32>
    %c0_52 = arith.constant 0 : index
    %c0_53 = arith.constant 0 : index
    %c0_54 = arith.constant 0 : index
    %77 = vector.load %arg11[%c0_52, %c0_53, %c0_54] : memref<1x16x16xf32, #tpu.memory_space<vmem>>, vector<1x16x16xf32>
    tpu.vector_store %arg11[%c0_52, %c0_53, %c0_54], %76 {strides = array<i32>} : memref<1x16x16xf32, #tpu.memory_space<vmem>>, vector<1x16x16xf32>,
    %78 = vector.shape_cast %75 : vector<16x16xf32> to vector<1x16x16xf32>
    %cst_55 = arith.constant dense<0x7F800000> : vector<1xf32>
    %79 = vector.multi_reduction <minimumf>, %78, %cst_55 [1, 2] : vector<1x16x16xf32> to vector<1xf32>
    %80 = vector.shape_cast %79 : vector<1xf32> to vector<1x1x1xf32>
    %81 = vector.extract %80[0, 0, 0] : f32 from vector<1x1x1xf32>
    %82 = vector.broadcast %81 : f32 to vector<1x8x128xf32>
    %c0_56 = arith.constant 0 : index
    %c0_57 = arith.constant 0 : index
    %c0_58 = arith.constant 0 : index
    %83 = vector.load %arg12[%c0_56, %c0_57, %c0_58] : memref<1x8x128xf32, #tpu.memory_space<vmem>>, vector<1x8x128xf32>
    tpu.vector_store %arg12[%c0_56, %c0_57, %c0_58], %82 {strides = array<i32>} : memref<1x8x128xf32, #tpu.memory_space<vmem>>, vector<1x8x128xf32>,
    %84 = vector.shape_cast %75 : vector<16x16xf32> to vector<1x16x16xf32>
    %cst_59 = arith.constant dense<0xFF800000> : vector<1xf32>
    %85 = vector.multi_reduction <maximumf>, %84, %cst_59 [1, 2] : vector<1x16x16xf32> to vector<1xf32>
    %86 = vector.shape_cast %85 : vector<1xf32> to vector<1x1x1xf32>
    %87 = vector.extract %86[0, 0, 0] : f32 from vector<1x1x1xf32>
    %88 = vector.broadcast %87 : f32 to vector<1x8x128xf32>
    %c0_60 = arith.constant 0 : index
    %c0_61 = arith.constant 0 : index
    %c0_62 = arith.constant 0 : index
    %89 = vector.load %arg13[%c0_60, %c0_61, %c0_62] : memref<1x8x128xf32, #tpu.memory_space<vmem>>, vector<1x8x128xf32>
    tpu.vector_store %arg13[%c0_60, %c0_61, %c0_62], %88 {strides = array<i32>} : memref<1x8x128xf32, #tpu.memory_space<vmem>>, vector<1x8x128xf32>,
    return
  }
  func.func @transform_0(%arg0: i32) -> (i32, i32, i32, i32) {
    %c0_i32 = arith.constant 0 : i32
    %c0_i32_0 = arith.constant 0 : i32
    %c0_i32_1 = arith.constant 0 : i32
    %c0_i32_2 = arith.constant 0 : i32
    return %c0_i32, %arg0, %c0_i32_0, %c0_i32_1 : i32, i32, i32, i32
  }
  func.func @transform_1(%arg0: i32) -> (i32, i32) {
    %c0_i32 = arith.constant 0 : i32
    %c0_i32_0 = arith.constant 0 : i32
    %c0_i32_1 = arith.constant 0 : i32
    return %c0_i32, %c0_i32_0 : i32, i32
  }
  func.func @transform_2(%arg0: i32) -> (i32, i32) {
    %c0_i32 = arith.constant 0 : i32
    %c0_i32_0 = arith.constant 0 : i32
    %c0_i32_1 = arith.constant 0 : i32
    return %c0_i32, %c0_i32_0 : i32, i32
  }
  func.func @transform_3(%arg0: i32) -> (i32, i32) {
    %c0_i32 = arith.constant 0 : i32
    %c0_i32_0 = arith.constant 0 : i32
    %c0_i32_1 = arith.constant 0 : i32
    return %c0_i32, %c0_i32_0 : i32, i32
  }
  func.func @transform_4(%arg0: i32) -> (i32, i32) {
    %c0_i32 = arith.constant 0 : i32
    %c0_i32_0 = arith.constant 0 : i32
    %c0_i32_1 = arith.constant 0 : i32
    return %c0_i32, %c0_i32_0 : i32, i32
  }
  func.func @transform_5(%arg0: i32) -> (i32, i32) {
    %c0_i32 = arith.constant 0 : i32
    %c0_i32_0 = arith.constant 0 : i32
    %c0_i32_1 = arith.constant 0 : i32
    return %c0_i32, %c0_i32_0 : i32, i32
  }
  func.func @transform_6(%arg0: i32) -> (i32, i32) {
    %c0_i32 = arith.constant 0 : i32
    %c0_i32_0 = arith.constant 0 : i32
    %c0_i32_1 = arith.constant 0 : i32
    return %c0_i32, %c0_i32_0 : i32, i32
  }
  func.func @transform_7(%arg0: i32) -> (i32, i32) {
    %c0_i32 = arith.constant 0 : i32
    %c0_i32_0 = arith.constant 0 : i32
    %c0_i32_1 = arith.constant 0 : i32
    return %c0_i32, %c0_i32_0 : i32, i32
  }
  func.func @transform_8(%arg0: i32) -> (i32, i32) {
    %c0_i32 = arith.constant 0 : i32
    %c0_i32_0 = arith.constant 0 : i32
    %c0_i32_1 = arith.constant 0 : i32
    return %c0_i32, %c0_i32_0 : i32, i32
  }
  func.func @transform_9(%arg0: i32) -> (i32, i32) {
    %c0_i32 = arith.constant 0 : i32
    %c0_i32_0 = arith.constant 0 : i32
    %c0_i32_1 = arith.constant 0 : i32
    return %c0_i32, %c0_i32_0 : i32, i32
  }
  func.func @transform_10(%arg0: i32) -> (i32, i32, i32) {
    %c0_i32 = arith.constant 0 : i32
    %c0_i32_0 = arith.constant 0 : i32
    %c0_i32_1 = arith.constant 0 : i32
    return %arg0, %c0_i32, %c0_i32_0 : i32, i32, i32
  }
  func.func @transform_11(%arg0: i32) -> (i32, i32, i32) {
    %c0_i32 = arith.constant 0 : i32
    %c0_i32_0 = arith.constant 0 : i32
    %c0_i32_1 = arith.constant 0 : i32
    return %arg0, %c0_i32, %c0_i32_0 : i32, i32, i32
  }
  func.func @transform_12(%arg0: i32) -> (i32, i32, i32) {
    %c0_i32 = arith.constant 0 : i32
    %c0_i32_0 = arith.constant 0 : i32
    %c0_i32_1 = arith.constant 0 : i32
    return %arg0, %c0_i32, %c0_i32_0 : i32, i32, i32
  }
}

module attributes {stable_mosaic.version = 11 : i64} {
  func.func @_loss_kernel(%arg0: i32, %arg1: memref<2xf32, #tpu.memory_space<smem>>, %arg2: memref<2x16x16xf32, #tpu.memory_space<vmem>>, %arg3: memref<2x2x16x16xf32, #tpu.memory_space<vmem>>, %arg4: memref<1x8x128xf32, #tpu.memory_space<vmem>>) attributes {dimension_semantics = [#tpu.dimension_semantics<parallel>], iteration_bounds = array<i64: 1>, scalar_prefetch = 0 : i64, scratch_operands = 0 : i64, tpu.core_type = #tpu.core_type<tc>, window_params = [{transform_indices = @transform_0, window_bounds = array<i64: 2>}, {transform_indices = @transform_1, window_bounds = array<i64: 2, 16, 16>}, {transform_indices = @transform_2, window_bounds = array<i64: 2, 2, 16, 16>}, {transform_indices = @transform_3, window_bounds = array<i64: 1, 8, 128>}]} {
    %c0 = arith.constant 0 : index
    %0 = memref.load %arg1[%c0] : memref<2xf32, #tpu.memory_space<smem>>
    %c1 = arith.constant 1 : index
    %1 = memref.load %arg1[%c1] : memref<2xf32, #tpu.memory_space<smem>>
    %c0_0 = arith.constant 0 : index
    %c0_1 = arith.constant 0 : index
    %c0_2 = arith.constant 0 : index
    %2 = vector.load %arg2[%c0_0, %c0_1, %c0_2] : memref<2x16x16xf32, #tpu.memory_space<vmem>>, vector<2x16x16xf32>
    %3 = vector.shape_cast %2 : vector<2x16x16xf32> to vector<32x16xf32>
    %4 = vector.broadcast %0 : f32 to vector<32x16xf32>
    %5 = arith.subf %3, %4 : vector<32x16xf32>
    %6 = vector.broadcast %1 : f32 to vector<32x16xf32>
    %7 = arith.mulf %5, %6 : vector<32x16xf32>
    %8 = math.floor %7 : vector<32x16xf32>
    %cst = arith.constant 0.000000e+00 : f32
    %cst_3 = arith.constant 2.550000e+02 : f32
    %9 = vector.broadcast %cst : f32 to vector<32x16xf32>
    %10 = arith.maximumf %9, %8 : vector<32x16xf32>
    %11 = vector.broadcast %cst_3 : f32 to vector<32x16xf32>
    %12 = arith.minimumf %11, %10 : vector<32x16xf32>
    %c0_4 = arith.constant 0 : index
    %c0_5 = arith.constant 0 : index
    %c0_6 = arith.constant 0 : index
    %c0_7 = arith.constant 0 : index
    %13 = vector.load %arg3[%c0_4, %c0_5, %c0_6, %c0_7] : memref<2x2x16x16xf32, #tpu.memory_space<vmem>>, vector<1x2x16x16xf32>
    %14 = vector.shape_cast %13 : vector<1x2x16x16xf32> to vector<2x16x16xf32>
    %15 = vector.shape_cast %14 : vector<2x16x16xf32> to vector<32x16xf32>
    %16 = arith.subf %12, %15 : vector<32x16xf32>
    %c1_8 = arith.constant 1 : index
    %c0_9 = arith.constant 0 : index
    %c0_10 = arith.constant 0 : index
    %c0_11 = arith.constant 0 : index
    %17 = vector.load %arg3[%c1_8, %c0_9, %c0_10, %c0_11] : memref<2x2x16x16xf32, #tpu.memory_space<vmem>>, vector<1x2x16x16xf32>
    %18 = vector.shape_cast %17 : vector<1x2x16x16xf32> to vector<2x16x16xf32>
    %19 = vector.shape_cast %18 : vector<2x16x16xf32> to vector<32x16xf32>
    %20 = arith.subf %12, %19 : vector<32x16xf32>
    %21 = arith.mulf %16, %16 : vector<32x16xf32>
    %22 = vector.shape_cast %21 : vector<32x16xf32> to vector<1x32x16xf32>
    %cst_12 = arith.constant dense<0.000000e+00> : vector<1xf32>
    %23 = vector.multi_reduction <add>, %22, %cst_12 [1, 2] : vector<1x32x16xf32> to vector<1xf32>
    %24 = vector.shape_cast %23 : vector<1xf32> to vector<1x1x1xf32>
    %25 = vector.extract %24[0, 0, 0] : f32 from vector<1x1x1xf32>
    %26 = arith.mulf %20, %20 : vector<32x16xf32>
    %27 = vector.shape_cast %26 : vector<32x16xf32> to vector<1x32x16xf32>
    %cst_13 = arith.constant dense<0.000000e+00> : vector<1xf32>
    %28 = vector.multi_reduction <add>, %27, %cst_13 [1, 2] : vector<1x32x16xf32> to vector<1xf32>
    %29 = vector.shape_cast %28 : vector<1xf32> to vector<1x1x1xf32>
    %30 = vector.extract %29[0, 0, 0] : f32 from vector<1x1x1xf32>
    %31 = arith.addf %25, %30 : f32
    %32 = vector.broadcast %31 : f32 to vector<1x8x128xf32>
    %c0_14 = arith.constant 0 : index
    %c0_15 = arith.constant 0 : index
    %c0_16 = arith.constant 0 : index
    %33 = vector.load %arg4[%c0_14, %c0_15, %c0_16] : memref<1x8x128xf32, #tpu.memory_space<vmem>>, vector<1x8x128xf32>
    tpu.vector_store %arg4[%c0_14, %c0_15, %c0_16], %32 {strides = array<i32>} : memref<1x8x128xf32, #tpu.memory_space<vmem>>, vector<1x8x128xf32>,
    return
  }
  func.func @transform_0(%arg0: i32) -> i32 {
    %c0_i32 = arith.constant 0 : i32
    %c0_i32_0 = arith.constant 0 : i32
    return %c0_i32 : i32
  }
  func.func @transform_1(%arg0: i32) -> (i32, i32, i32) {
    %c0_i32 = arith.constant 0 : i32
    %c0_i32_0 = arith.constant 0 : i32
    %c0_i32_1 = arith.constant 0 : i32
    return %arg0, %c0_i32, %c0_i32_0 : i32, i32, i32
  }
  func.func @transform_2(%arg0: i32) -> (i32, i32, i32, i32) {
    %c0_i32 = arith.constant 0 : i32
    %c0_i32_0 = arith.constant 0 : i32
    %c0_i32_1 = arith.constant 0 : i32
    %c0_i32_2 = arith.constant 0 : i32
    return %c0_i32, %arg0, %c0_i32_0, %c0_i32_1 : i32, i32, i32, i32
  }
  func.func @transform_3(%arg0: i32) -> (i32, i32, i32) {
    %c0_i32 = arith.constant 0 : i32
    %c0_i32_0 = arith.constant 0 : i32
    %c0_i32_1 = arith.constant 0 : i32
    return %arg0, %c0_i32, %c0_i32_0 : i32, i32, i32
  }
}

</mosaic_0001>

<bundles_post_ra>
// kernel: fourier_loss.3
= control target key start
LH: loop header
LB: loop body
LE: loop exit
PB: predicated region body
PF: predicated region fallthrough
CT: control target
= control target key end

     0   :  { %8 = vsyncpa [#allocation3], 0  ;;  %s216_s0 = inlined_call_operand.vmem [shape: f32[2], index: 0, kind: input, shape index: {}]   ;;  %s217_s1 = inlined_call_operand.vmem [shape: f32[2,16,16], index: 1, kind: input, shape index: {}]   ;;  %s218_s2 = inlined_call_operand.vmem [shape: f32[2,2,16,16], index: 2, kind: input, shape index: {}]   ;;  %s219_s3 = inlined_call_operand.vmem [shape: f32[1,8,128], index: 3, kind: output, shape index: {}]  }
   0x1   :  { %s15_s14 = sshll.u32 %s216_s0, 4  ;;  %s16_s14 = int_to_ptr.vmem [resolvable:$true] %s15_s14 }
   0x2   :  { %s131_s15 = scalar_lea.vmem %s16_s14, 16  ;;  %p136_p1 = scmp.lt.s32.totalorder %s16_s14, %s16_s14 }
   0x3   :  { %p132_p0 = scmp.ne.s32.totalorder %s16_s14, %s131_s15  ;;  %p137_p2 = scmp.lt.s32.totalorder %s131_s15, %s131_s15 }
   0x5   :  { %p138_p3 = por %p137_p2, %p136_p1 }
   0x7   :  { %p139_p4 = pnand %p138_p3, %p132_p0 }
   0x9   :  { %142 = shalt.err (!%p139_p4)
}
   0xa   :  { %s145_s16 = smov [#allocation2]  }
   0xb   :  { %18 = dma.vmem_to_smem %s16_s14, 16, %s145_s16, [#allocation3]  }
   0xc   :  { %143 = dma.done.wait [#allocation3], 16  }
   0xd   :  { %144 = vsyncadd [#allocation3], 4294967280 }
   0xe   :  { %26 = sfence }
   0xf   :  { %s27_s17 = sld [smem:[#allocation2]]  ;;  %s121_s18 = sld [smem:[#allocation2 + $0x1]]  ;;  %v29_v0 = vld [vmem:[%s217_s1] sm:$0xff]  ;;  %v30_v1 = vld [vmem:[%s217_s1 + $0x8] sm:$0xff]  ;;  %v31_v2 = vld [vmem:[%s217_s1 + $0x10] sm:$0xff]  ;;  %vm76_vm0 = vcmask 130048  }
  0x10   :  { %v32_v3 = vld [vmem:[%s217_s1 + $0x18] sm:$0xff]  ;;  %v55_v18 = vld [vmem:[%s218_s2] sm:$0xff]  ;;  %v56_v23 = vld [vmem:[%s218_s2 + $0x8] sm:$0xff] }
  0x11   :  { %v57_v24 = vld [vmem:[%s218_s2 + $0x10] sm:$0xff]  ;;  %v58_v25 = vld [vmem:[%s218_s2 + $0x18] sm:$0xff]  ;;  %v122_v26 = vld [vmem:[%s218_s2 + $0x20] sm:$0xff] }
  0x12   :  { %v123_v27 = vld [vmem:[%s218_s2 + $0x28] sm:$0xff]  ;;  %v124_v32 = vld [vmem:[%s218_s2 + $0x30] sm:$0xff]  ;;  %v125_v33 = vld [vmem:[%s218_s2 + $0x38] sm:$0xff] }
  0x15   :  { %v33_v4 = vstv %s27_s17  ;;  %v38_v5 = vstv %s121_s18 }
  0x16   :  { %v34_v6 = vsub.f32 %v29_v0, %v33_v4  ;;  %v35_v7 = vsub.f32 %v30_v1, %v33_v4  ;;  %v36_v8 = vsub.f32 %v31_v2, %v33_v4  ;;  %v37_v9 = vsub.f32 %v32_v3, %v33_v4 }
  0x18   :  { %v39_v10 = vmul.f32 %v38_v5, %v34_v6  ;;  %v40_v11 = vmul.f32 %v38_v5, %v35_v7  ;;  %v41_v12 = vmul.f32 %v38_v5, %v36_v8  ;;  %v42_v13 = vmul.f32 %v38_v5, %v37_v9 }
  0x1a   :  { %v43_v14 = vfloor.f32 %v39_v10  ;;  %v44_v15 = vfloor.f32 %v40_v11  ;;  %v45_v16 = vfloor.f32 %v41_v12  ;;  %v46_v17 = vfloor.f32 %v42_v13 }
  0x1c   :  { %v47_v19 = vmax.f32 %v43_v14, 0.0  ;;  %v48_v20 = vmax.f32 %v44_v15, 0.0  ;;  %v49_v21 = vmax.f32 %v45_v16, 0.0  ;;  %v50_v22 = vmax.f32 %v46_v17, 0.0 }
  0x1e   :  { %v51_v28 = vmin.f32 %v47_v19, 255.0  ;;  %v52_v29 = vmin.f32 %v48_v20, 255.0  ;;  %v53_v30 = vmin.f32 %v49_v21, 255.0  ;;  %v54_v31 = vmin.f32 %v50_v22, 255.0 }
  0x20   :  { %v59_v34 = vsub.f32 %v51_v28, %v55_v18  ;;  %v60_v35 = vsub.f32 %v52_v29, %v56_v23  ;;  %v61_v36 = vsub.f32 %v53_v30, %v57_v24  ;;  %v62_v37 = vsub.f32 %v54_v31, %v58_v25 }
  0x21   :  { %v68_v38 = vsub.f32 %v51_v28, %v122_v26  ;;  %v69_v39 = vsub.f32 %v52_v29, %v123_v27  ;;  %v70_v40 = vsub.f32 %v53_v30, %v124_v32  ;;  %v71_v41 = vsub.f32 %v54_v31, %v125_v33 }
  0x22   :  { %v72_v42 = vmul.f32 %v59_v34, %v59_v34  ;;  %v73_v43 = vmul.f32 %v60_v35, %v60_v35  ;;  %v74_v44 = vmul.f32 %v61_v36, %v61_v36  ;;  %v75_v45 = vmul.f32 %v62_v37, %v62_v37 }
  0x23   :  { %v93_v46 = vmul.f32 %v68_v38, %v68_v38  ;;  %v94_v47 = vmul.f32 %v69_v39, %v69_v39  ;;  %v95_v48 = vmul.f32 %v70_v40, %v70_v40  ;;  %v96_v52 = vmul.f32 %v71_v41, %v71_v41 }
  0x24   :  { %v77_v49 = vsel %vm76_vm0, %v72_v42, 0.0  ;;  %v78_v50 = vsel %vm76_vm0, %v73_v43, 0.0  ;;  %v80_v51 = vsel %vm76_vm0, %v74_v44, 0.0  ;;  %v82_v57 = vsel %vm76_vm0, %v75_v45, 0.0 }
  0x25   :  { %v79_v53 = vadd.f32 %v78_v50, %v77_v49  ;;  %v97_v54 = vsel %vm76_vm0, %v93_v46, 0.0  ;;  %v98_v55 = vsel %vm76_vm0, %v94_v47, 0.0  ;;  %v100_v56 = vsel %vm76_vm0, %v95_v48, 0.0 }
  0x26   :  { %v99_v58 = vadd.f32 %v98_v55, %v97_v54  ;;  %v102_v61 = vsel %vm76_vm0, %v96_v52, 0.0 }
  0x27   :  { %v81_v59 = vadd.f32 %v80_v51, %v79_v53 }
  0x28   :  { %v101_v60 = vadd.f32 %v100_v56, %v99_v58 }
  0x29   :  { %v83_v62 = vadd.f32 %v82_v57, %v81_v59 }
  0x2a   :  { %v103_v63 = vadd.f32 %v102_v61, %v101_v60 }
  0x2b   :  { %84 = vadd.xlane.f32.xlu0 %v83_v62 }
  0x2f   :  { %104 = vadd.xlane.f32.xlu0 %v103_v63 }
  0xb8   :  { %v85_v0 = vpop.xlane.xlu0 %84 }
  0xb9   :  { %v86_v1 = vrot.slane %v85_v0, 4 }
  0xbb   :  { %v87_v2 = vadd.f32 %v86_v1, %v85_v0 }
  0xbc   :  { %v105_v3 = vpop.xlane.xlu0 %104 }
  0xbd   :  { %v88_v4 = vrot.slane %v87_v2, 2  ;;  %v106_v5 = vrot.slane %v105_v3, 4 }
  0xbf   :  { %v107_v6 = vadd.f32 %v106_v5, %v105_v3  ;;  %v89_v7 = vadd.f32 %v88_v4, %v87_v2 }
  0xc1   :  { %v108_v8 = vrot.slane %v107_v6, 2  ;;  %v90_v9 = vrot.slane %v89_v7, 1 }
  0xc3   :  { %v109_v10 = vadd.f32 %v108_v8, %v107_v6  ;;  %v91_v11 = vadd.f32 %v90_v9, %v89_v7 }
  0xc5   :  { %126 = vpush %v91_v11  ;;  %v110_v12 = vrot.slane %v109_v10, 1 }
  0xc7   :  { %v111_v13 = vadd.f32 %v110_v12, %v109_v10 }
  0xc9   :  { %128 = vpush %v111_v13 }
  0xf6   :  { %s127_s2 = spop %126 }
  0xfa   :  { %s129_s14 = spop %128 }
  0xfb   :  { %s113_s15 = sadd.f32 %s129_s14, %s127_s2 }
  0xfd   :  { %v114_v14 = vstv %s113_s15 }
  0xfe   :  { %115 = vst [vmem:[%s219_s3] sm:$0xff] %v114_v14 }
  0xff   :  { %120 = vsyncpa [#allocation3], 1 }

// kernel: fourier_loss.2
= control target key start
LH: loop header
LB: loop body
LE: loop exit
PB: predicated region body
PF: predicated region fallthrough
CT: control target
= control target key end

     0   :  { %s2448_s21 = smov 0   ;;  %s2450_s22 = smov 0   ;;  %s2682_s0 = inlined_call_operand.vmem [shape: f32[2,2,16,16], index: 0, kind: input, shape index: {}]   ;;  %s2683_s1 = inlined_call_operand.vmem [shape: f32[16,16], index: 1, kind: input, shape index: {}]   ;;  %s2684_s2 = inlined_call_operand.vmem [shape: f32[16,16], index: 2, kind: input, shape index: {}]   ;;  %s2685_s3 = inlined_call_operand.vmem [shape: f32[16,16], index: 3, kind: input, shape index: {}]   ;;  %s2686_s4 = inlined_call_operand.vmem [shape: f32[16,16], index: 4, kind: input, shape index: {}]   ;;  %s2687_s5 = inlined_call_operand.vmem [shape: f32[16,16], index: 5, kind: input, shape index: {}]   ;;  %s2688_s6 = inlined_call_operand.vmem [shape: f32[16,16], index: 6, kind: input, shape index: {}]   ;;  %s2689_s7 = inlined_call_operand.vmem [shape: f32[16,16], index: 7, kind: input, shape index: {}]   ;;  %s2690_s8 = inlined_call_operand.vmem [shape: f32[16,16], index: 8, kind: input, shape index: {}]   ;;  %s2691_s9 = inlined_call_operand.vmem [shape: f32[16,16], index: 9, kind: input, shape index: {}]   ;;  %s2692_s10 = inlined_call_operand.vmem [shape: f32[2,16,16], index: 10, kind: output, shape index: {0}]   ;;  %s2693_s11 = inlined_call_operand.vmem [shape: f32[2,8,128], index: 11, kind: output, shape index: {1}]   ;;  %s2694_s12 = inlined_call_operand.vmem [shape: f32[2,8,128], index: 12, kind: output, shape index: {2}]  }
   0x1   :  { %s2452_s23 = smov 0  }
   0x2 LB: > { %s2002_s24 = sadd.s32 4294967295, %s2381_s23   ;;  %s2465_s25 = sadd.s32 1, %s2381_s23   ;;  %s2381_s23 = sphi %s2452_s23, %s2699_s23   ;;  %s2377_s22 = sphi %s2450_s22, %s2698_s22   ;;  %s2373_s21 = sphi %s2448_s21, %s2697_s21  }
   0x3   : > { %s27_s26 = ssub.s32 %s2381_s23, %s2465_s25  ;;  %s30_s27 = sadd.s32 1, %s2377_s22 }
   0x4   : > { %p28_p0 = scmp.eq.s32.totalorder %s27_s26, 0  ;;  %p37_p1 = scmp.ne.s32.totalorder %s2377_s22, %s2373_s21 }
   0x5   : > { %p38_p2 = scmp.eq.s32.totalorder %s2381_s23, 0  ;;  %p2005_p4 = scmp.ge.s32.totalorder %s2381_s23, 2 }
   0x6   : > { %s2474_s28 = scalar_select %p28_p0, %s2377_s22, %s30_s27  }
   0x7   : > { %p39_p3 = por %p38_p2, %p37_p1  ;;  %357 = sbr.rel (%p2005_p4) target bundleno = 21 (0x15), region = 52 }
   0xe   : > { %360 = sbr.rel (!%p39_p3) target bundleno = 21 (0x15), region = 56  ;;  %s362_s29 = sand.u32 (%p39_p3), 1, %s2377_s22  }
   0xf   : > { %s2057_s30 = sshll.u32 (%p39_p3), %s2381_s23, 4  ;;  %s2006_s13 = sshll.u32 (%p39_p3), %s362_s29, 5 }
  0x10   : > { %s367_s16 = scalar_lea.vmem (%p39_p3), %s2682_s0, %s2057_s30  ;;  %s364_s17 = scalar_lea.vmem (%p39_p3), [#allocation4], %s2006_s13 }
  0x11   : > { %v401_v0 = vld [vmem:[%s367_s16] sm:$0xff] (%p39_p3)  ;;  %v403_v1 = vld [vmem:[%s367_s16 + $0x8] sm:$0xff] (%p39_p3) }
  0x12   : > { %v405_v2 = vld [vmem:[%s367_s16 + $0x20] sm:$0xff] (%p39_p3)  ;;  %402 = vst [vmem:[%s364_s17] sm:$0xff] (%p39_p3), %v401_v0  ;;  %404 = vst [vmem:[%s364_s17 + $0x8] sm:$0xff] (%p39_p3), %v403_v1  ;;  %v407_v3 = vld [vmem:[%s367_s16 + $0x28] sm:$0xff] (%p39_p3) }
  0x13   : > { %406 = vst [vmem:[%s364_s17 + $0x10] sm:$0xff] (%p39_p3), %v405_v2  ;;  %408 = vst [vmem:[%s364_s17 + $0x18] sm:$0xff] (%p39_p3), %v407_v3 }
  0x15 PF: > { %p2009_p5 = scmp.ge.s32.totalorder %s2381_s23, 1  ;;  %p413_p6 = scmp.lt.s32.totalorder %s2381_s23, 3 }
  0x17   : > { %p414_p7 = pnand %p2009_p5, %p413_p6 }
  0x18   : > { %v486_v4 = vld [vmem:[%s2686_s4] sm:$0xff] (!%p414_p7)  ;;  %v487_v5 = vld [vmem:[%s2686_s4 + $0x8] sm:$0xff] (!%p414_p7)  ;;  %s420_s27 = sand.u32 (!%p414_p7), 1, %s2373_s21   ;;  %vm488_vm0 = vcmask (!%p414_p7), 130048   ;;  %p469_p8 = scmp.lt.s32.totalorder (!%p414_p7), %s2002_s24, 1 }
  0x19   : > { %417 = sbr.rel (%p414_p7) target bundleno = 1178 (0x49a), region = 94  ;;  %v586_v6 = vld [vmem:[%s2687_s5] sm:$0xff] (!%p414_p7)  ;;  %v2245_v7 = vpack.c.bf16 (!%p414_p7), %v487_v5, %v486_v4  ;;  %s2010_s13 = sshll.u32 (!%p414_p7), %s420_s27, 5  ;;  %v587_v8 = vld [vmem:[%s2687_s5 + $0x8] sm:$0xff] (!%p414_p7) }
  0x1a   : > { %v2249_v9 = vpack.c.bf16 (!%p414_p7), %v587_v8, %v586_v6  ;;  %s422_s16 = scalar_lea.vmem (!%p414_p7), [#allocation4], %s2010_s13  ;;  %v673_v14 = vld [vmem:[%s2684_s2] sm:$0xff] (!%p414_p7)  ;;  %v674_v23 = vld [vmem:[%s2684_s2 + $0x8] sm:$0xff] (!%p414_p7) }
  0x1b   : > { %2246 = vmatprep.subr.bf16.mxu0 (!%p414_p7), %v2245_v7  ;;  %v482_v10 = vld [vmem:[%s422_s16] sm:$0xff] (!%p414_p7)  ;;  %v483_v11 = vld [vmem:[%s422_s16 + $0x8] sm:$0xff] (!%p414_p7)  ;;  %v484_v12 = vld [vmem:[%s422_s16 + $0x10] sm:$0xff] (!%p414_p7) }
  0x1c   : > { %2248 = vmatpush3.bf16.msra.mxu0 (!%p414_p7), %v2245_v7  ;;  %2131 = vmatprep.mubr.msk.f32.mxu0 (!%p414_p7), %vm488_vm0, %v482_v10  ;;  %v485_v13 = vld [vmem:[%s422_s16 + $0x18] sm:$0xff] (!%p414_p7)  ;;  %v675_v15 = vld [vmem:[%s2685_s3] sm:$0xff] (!%p414_p7)  ;;  %v676_v27 = vld [vmem:[%s2685_s3 + $0x8] sm:$0xff] (!%p414_p7) }
  0x1d   : > { %2250 = vmatprep.subr.bf16.mxu1 (!%p414_p7), %v2249_v9  ;;  %2141 = vmatprep.mubr.msk.f32.mxu1 (!%p414_p7), %vm488_vm0, %v482_v10  ;;  %v677_v30 = vld [vmem:[%s2688_s6] sm:$0xff] (!%p414_p7)  ;;  %v682_v1 = vld [vmem:[%s2683_s1 + $0x8] sm:$0xff] (!%p414_p7) }
  0x1e   : > { %2252 = vmatpush3.bf16.msra.mxu1 (!%p414_p7), %v2249_v9  ;;  %v681_v0 = vld [vmem:[%s2683_s1] sm:$0xff] (!%p414_p7)  ;;  %vm684_vm5 = vcmp.gt.f32.partialorder (!%p414_p7), %v682_v1, 0.5 }
  0x1f   : > { %2132 = vmatmul.mubr.msk.f32.vlgmr.msra.gmra.mrb[0].mxu0 (!%p414_p7), %vm488_vm0, %v483_v11  ;;  %vm683_vm4 = vcmp.gt.f32.partialorder (!%p414_p7), %v681_v0, 0.5 }
  0x20   : > { %2134 = vmatprep.mubr.msk.f32.mxu0 %vm488_vm0, %v484_v12  ;;  %s2701_s24 = smov (!%p469_p8, %s2002_s24), 1 }
  0x21   : > { %2142 = vmatmul.mubr.msk.f32.vlgmr.msra.gmra.mrb[0].mxu1 %vm488_vm0, %v483_v11  ;;  %s2058_s18 = sshll.u32 %s2701_s24, 4  ;;  %s2013_s23 = sshll.u32 %s2701_s24, 3 }
  0x22   : > { %2144 = vmatprep.mubr.msk.f32.mxu1 %vm488_vm0, %v484_v12  ;;  %s473_s26 = scalar_lea.vmem %s2692_s10, %s2058_s18  ;;  %s477_s30 = scalar_lea.vmem %s2693_s11, %s2013_s23 }
  0x23   : > { %2135 = vmatmul.mubr.msk.f32.gmra.mrb[2].mxu0 %vm488_vm0, %v485_v13  ;;  %s481_s16 = scalar_lea.vmem %s2694_s12, %s2013_s23 }
  0x24   : > { %2151 = vmatprep.mubr.msk.f32.mxu0 %vm488_vm0, %v673_v14 }
  0x25   : > { %2145 = vmatmul.mubr.msk.f32.gmra.mrb[2].mxu1 %vm488_vm0, %v485_v13 }
  0x26   : > { %2158 = vmatprep.mubr.msk.f32.mxu1 %vm488_vm0, %v675_v15 }
  0xf2   : > { %v2133_v16 = vpop.f32.mrb[0].mxu0 }
  0xf3   : > { %v567_v17 = vpop.f32.mrb[1].mxu0 }
  0xf4   : > { %v2253_v18 = vpack.c.bf16 %v2133_v16, %v567_v17  ;;  %v2143_v19 = vpop.f32.mrb[0].mxu1 }
  0xf5   : > { %v654_v20 = vpop.f32.mrb[1].mxu1 }
  0xf6   : > { %v2257_v21 = vpack.c.bf16 %v2143_v19, %v654_v20  ;;  %2254 = vmatprep.subr.bf16.mxu0 %v2253_v18  ;;  %v2136_v22 = vpop.f32.mrb[2].mxu0 }
  0xf7   : > { %2256 = vmatpush3.bf16.msra.mxu0 %v2253_v18  ;;  %v577_v24 = vpop.f32.mrb[3].mxu0 }
  0xf8   : > { %2258 = vmatprep.subr.bf16.mxu1 %v2257_v21  ;;  %2262 = vmatprep.subr.bf16.mxu0 %v2257_v21  ;;  %v2269_v25 = vpack.c.bf16 %v2136_v22, %v577_v24  ;;  %v2146_v26 = vpop.f32.mrb[2].mxu1 }
  0xf9   : > { %2260 = vmatpush3.bf16.msra.mxu1 %v2257_v21  ;;  %v664_v28 = vpop.f32.mrb[3].mxu1 }
  0xfa   : > { %2152 = vmatmul.mubr.msk.f32.vlgmr.msra.gmra.mrb[4].mxu0 %vm488_vm0, %v674_v23  ;;  %v2273_v29 = vpack.c.bf16 %v2146_v26, %v664_v28  ;;  %2270 = vmatprep.subr.bf16.mxu1 %v2269_v25 }
  0xfb   : > { %2264 = vmatpush3.bf16.msra.mxu0 %v2257_v21  ;;  %2165 = vmatprep.mubr.msk.f32.mxu0 %vm488_vm0, %v673_v14 }
  0xfc   : > { %2266 = vmatprep.subr.bf16.mxu0 %v2253_v18  ;;  %2159 = vmatmul.mubr.msk.f32.vlgmr.msra.gmra.mrb[4].mxu1 %vm488_vm0, %v676_v27 }
  0xfd   : > { %2272 = vmatpush3.bf16.msra.mxu1 %v2269_v25  ;;  %2179 = vmatprep.mubr.msk.f32.mxu1 %vm488_vm0, %v673_v14 }
  0xfe   : > { %2166 = vmatmul.mubr.msk.f32.vlgmr.msra.gmra.mrb[6].mxu0 %vm488_vm0, %v674_v23  ;;  %2274 = vmatprep.subr.bf16.mxu1 %v2273_v29 }
  0xff   : > { %2268 = vmatpush3.bf16.msra.mxu0 %v2253_v18  ;;  %2172 = vmatprep.mubr.msk.f32.mxu0 %vm488_vm0, %v675_v15 }
 0x100   : > { %2278 = vmatprep.subr.bf16.mxu0 %v2273_v29  ;;  %2180 = vmatmul.mubr.msk.f32.vlgmr.msra.gmra.mrb[6].mxu1 %vm488_vm0, %v674_v23 }
 0x101   : > { %2276 = vmatpush3.bf16.msra.mxu1 %v2273_v29  ;;  %2186 = vmatprep.mubr.msk.f32.mxu1 %vm488_vm0, %v675_v15 }
 0x104   : > { %2187 = vmatmul.mubr.msk.f32.vlgmr.msra.gmra.mrb[8].mxu1 %vm488_vm0, %v676_v27 }
 0x105   : > { %2207 = vmatprep.mubr.msk.f32.mxu1 %vm488_vm0, %v677_v30 }
 0x106   : > { %2173 = vmatmul.mubr.msk.f32.vlgmr.msra.gmra.mrb[6].mxu0 %vm488_vm0, %v676_v27 }
 0x107   : > { %2280 = vmatpush3.bf16.msra.mxu0 %v2273_v29  ;;  %2193 = vmatprep.mubr.msk.f32.mxu0 %vm488_vm0, %v673_v14 }
 0x108   : > { %2282 = vmatprep.subr.bf16.mxu0 %v2269_v25 }
 0x10a   : > { %2194 = vmatmul.mubr.msk.f32.vlgmr.msra.gmra.mrb[8].mxu0 %vm488_vm0, %v674_v23 }
 0x10b   : > { %2284 = vmatpush3.bf16.msra.mxu0 %v2269_v25  ;;  %2200 = vmatprep.mubr.msk.f32.mxu0 %vm488_vm0, %v675_v15 }
 0x112   : > { %2201 = vmatmul.mubr.msk.f32.vlgmr.msra.gmra.mrb[8].mxu0 %vm488_vm0, %v676_v27 }
 0x113   : > { %2221 = vmatprep.mubr.msk.f32.mxu0 %vm488_vm0, %v677_v30 }
 0x1cd   : > { %v2153_v31 = vpop.f32.mrb[4].mxu0 }
 0x1ce   : > { %v757_v32 = vpop.f32.mrb[5].mxu0 }
 0x1cf   : > { %v2160_v33 = vpop.f32.mrb[4].mxu1 }
 0x1d0   : > { %v2538_v34 = vsub.f32 %v2153_v31, %v2160_v33  ;;  %v838_v35 = vpop.f32.mrb[5].mxu1 }
 0x1d1   : > { %v2540_v36 = vsub.f32 %v757_v32, %v838_v35  ;;  %v679_v35 = vld [vmem:[%s2689_s7] sm:$0xff] }
 0x1d2   : > { %v1322_v44 = vmul.f32 %v2538_v34, %v2538_v34 }
 0x1d3   : > { %v2181_v37 = vpop.f32.mrb[6].mxu1  ;;  %v1321_v47 = vmul.f32 %v2540_v36, %v2540_v36 }
 0x1d4   : > { %v1065_v38 = vpop.f32.mrb[7].mxu1 }
 0x1d7   : > { %v2188_v39 = vpop.f32.mrb[8].mxu1 }
 0x1d8   : > { %v1150_v40 = vsub.f32 %v2181_v37, %v2188_v39  ;;  %v1140_v41 = vpop.f32.mrb[9].mxu1  ;;  %v1681_v37 = vld [vmem:[%s2690_s8] sm:$0xff] }
 0x1d9   : > { %v2542_v42 = vpop.f32.mrb[6].mxu0  ;;  %v1149_v43 = vsub.f32 %v1065_v38, %v1140_v41  ;;  %v1682_v38 = vld [vmem:[%s2690_s8 + $0x8] sm:$0xff] }
 0x1da   : > { %v1324_v45 = vmul.f32 %v2542_v42, %v2542_v42  ;;  %v2548_v46 = vpop.f32.mrb[7].mxu0  ;;  %v1302_v53 = vmul.f32 %v1150_v40, %v1150_v40  ;;  %v2305_v39 = vpack.c.bf16 %v1682_v38, %v1681_v37  ;;  %v1764_v40 = vld [vmem:[%s2691_s9] sm:$0xff]  ;;  %v1765_v41 = vld [vmem:[%s2691_s9 + $0x8] sm:$0xff] }
 0x1db   : > { %v1323_v48 = vmul.f32 %v2548_v46, %v2548_v46  ;;  %v1301_v56 = vmul.f32 %v1149_v43, %v1149_v43 }
 0x1dc   : > { %v2554_v49 = vadd.f32 %v1324_v45, %v1322_v44 }
 0x1dd   : > { %v2556_v50 = vadd.f32 %v1323_v48, %v1321_v47 }
 0x1de   : > { %vm1344_vm2 = vcmp.gt.f32.partialorder %v2554_v49, 0.0  ;;  %2347 = vrsqrt.f32 %v2554_v49  ;;  %vm1336_vm7 = vcmp.eq.f32.partialorder %v2554_v49, inf  ;;  %vm1338_vm8 = vcmp.eq.f32.partialorder %v2554_v49, 0.0 }
 0x1df   : > { %vm1343_vm1 = vcmp.gt.f32.partialorder %v2556_v50, 0.0  ;;  %2349 = vrsqrt.f32 %v2556_v50  ;;  %v1346_v60 = vsel %vm1344_vm2, %v2554_v49, 1.0  ;;  %vm1329_vm6 = vcmp.eq.f32.partialorder %v2556_v50, inf }
 0x1e0   : > { %vm2564_vm3 = vmpackc.low %vm1344_vm2, %vm1343_vm1  ;;  %v1345_v61 = vsel %vm1343_vm1, %v2556_v50, 1.0  ;;  %v1339_v5 = vand.u32 2147483648, %v2554_v49  ;;  %vm1331_vm9 = vcmp.eq.f32.partialorder %v2556_v50, 0.0  ;;  %v1332_v8 = vand.u32 2147483648, %v2556_v50 }
 0x1e5   : > { %v2202_v52 = vpop.f32.mrb[8].mxu0 }
 0x1e6   : > { %v1304_v54 = vmul.f32 %v2202_v52, %v2202_v52  ;;  %v1292_v55 = vpop.f32.mrb[9].mxu0 }
 0x1e7   : > { %v1303_v57 = vmul.f32 %v1292_v55, %v1292_v55 }
 0x1e8   : > { %v1306_v58 = vadd.f32 %v1304_v54, %v1302_v53  ;;  %v2348_v62 = vpop.eup %2347 }
 0x1e9   : > { %v1305_v59 = vadd.f32 %v1303_v57, %v1301_v56  ;;  %v2350_v63 = vpop.eup %2349  ;;  %v1335_v2 = vmul.f32 %v2348_v62, %v2554_v49 }
 0x1ea   : > { %2351 = vrsqrt.f32 %v1306_v58  ;;  %v1328_v3 = vmul.f32 %v2350_v63, %v2556_v50  ;;  %vm1316_vm10 = vcmp.eq.f32.partialorder %v1306_v58, inf  ;;  %v1319_v11 = vand.u32 2147483648, %v1306_v58 }
 0x1eb   : > { %2353 = vrsqrt.f32 %v1305_v59  ;;  %v1337_v9 = vsel %vm1336_vm7, %v2554_v49, %v1335_v2  ;;  %vm1309_vm11 = vcmp.eq.f32.partialorder %v1305_v59, inf  ;;  %v1312_v13 = vand.u32 2147483648, %v1305_v59 }
 0x1ec   : > { %2355 = vrsqrt.f32 %v1346_v60  ;;  %v1330_v12 = vsel %vm1329_vm6, %v2556_v50, %v1328_v3  ;;  %vm1318_vm12 = vcmp.eq.f32.partialorder %v1306_v58, 0.0  ;;  %vm1311_vm13 = vcmp.eq.f32.partialorder %v1305_v59, 0.0 }
 0x1ed   : > { %2357 = vrsqrt.f32 %v1345_v61  ;;  %v1340_v17 = vsel %vm1338_vm8, %v1339_v5, %v1337_v9  ;;  %v1333_v20 = vsel %vm1331_vm9, %v1332_v8, %v1330_v12 }
 0x1f4   : > { %v2352_v4 = vpop.eup %2351 }
 0x1f5   : > { %v2354_v6 = vpop.eup %2353  ;;  %v1315_v7 = vmul.f32 %v2352_v4, %v1306_v58 }
 0x1f6   : > { %v1308_v10 = vmul.f32 %v2354_v6, %v1305_v59  ;;  %v2356_v18 = vpop.eup %2355 }
 0x1f7   : > { %v1317_v14 = vsel %vm1316_vm10, %v1306_v58, %v1315_v7  ;;  %v2358_v22 = vpop.eup %2357 }
 0x1f8   : > { %v1310_v15 = vsel %vm1309_vm11, %v1305_v59, %v1308_v10  ;;  %v1320_v16 = vsel %vm1318_vm12, %v1319_v11, %v1317_v14 }
 0x1f9   : > { %v1313_v19 = vsel %vm1311_vm13, %v1312_v13, %v1310_v15  ;;  %v1342_v21 = vsel %vm684_vm5, %v1320_v16, %v1340_v17 }
 0x1fa   : > { %v1341_v23 = vsel %vm683_vm4, %v1313_v19, %v1333_v20  ;;  %v1350_v24 = vmul.f32 %v2356_v18, %v1342_v21 }
 0x1fb   : > { %v1349_v25 = vmul.f32 %v2358_v22, %v1341_v23 }
 0x1fc   : > { %v1352_v26 = vmul.f32 %v1350_v24, %v2538_v34  ;;  %v1356_v27 = vmul.f32 %v2542_v42, %v1350_v24  ;;  %v678_v34 = vld [vmem:[%s2688_s6 + $0x8] sm:$0xff]  ;;  %v2309_v42 = vpack.c.bf16 %v1765_v41, %v1764_v40 }
 0x1fd   : > { %v1351_v28 = vmul.f32 %v1349_v25, %v2540_v36  ;;  %v1355_v29 = vmul.f32 %v1349_v25, %v2548_v46  ;;  %v680_v36 = vld [vmem:[%s2689_s7 + $0x8] sm:$0xff] }
 0x1fe   : > { %v1354_v30 = vsel %vm1344_vm2, %v1352_v26, %v1342_v21 }
 0x1ff   : > { %v1353_v31 = vsel %vm1343_vm1, %v1351_v28, %v1341_v23  ;;  %v2289_v32 = vpack.c.bf16 %v1356_v27, %v1355_v29 }
 0x200   : > { %v2285_v33 = vpack.c.bf16 %v1354_v30, %v1353_v31 }
 0x201   : > { %2297 = vmatprep.subr.msk.bf16.mxu0 %vm2564_vm3, %v2289_v32 }
 0x202   : > { %2286 = vmatprep.subr.bf16.mxu1 %v2285_v33  ;;  %2300 = vmatpush3.bf16.msk.msra.mxu0 %vm2564_vm3, %v2289_v32 }
 0x203   : > { %2288 = vmatpush3.bf16.msra.mxu1 %v2285_v33  ;;  %2302 = vmatprep.subr.bf16.mxu0 %v2285_v33 }
 0x204   : > { %2291 = vmatprep.subr.msk.bf16.mxu1 %vm2564_vm3, %v2289_v32 }
 0x205   : > { %2222 = vmatmul.mubr.msk.f32.vlgmr.msra.gmra.mrb[10].mxu0 %vm488_vm0, %v678_v34 }
 0x206   : > { %2208 = vmatmul.mubr.msk.f32.vlgmr.msra.gmra.mrb[10].mxu1 %vm488_vm0, %v678_v34  ;;  %2304 = vmatpush3.bf16.msra.mxu0 %v2285_v33 }
 0x207   : > { %2294 = vmatpush3.bf16.msk.msra.mxu1 %vm2564_vm3, %v2289_v32  ;;  %2214 = vmatprep.mubr.msk.f32.mxu1 %vm488_vm0, %v679_v35 }
 0x208   : > { %2228 = vmatprep.mubr.msk.f32.mxu0 %vm488_vm0, %v679_v35  ;;  %2306 = vmatprep.subr.bf16.mxu1 %v2305_v39 }
 0x20a   : > { %2215 = vmatmul.mubr.msk.f32.vlgmr.msra.gmra.mrb[12].mxu1 %vm488_vm0, %v680_v36 }
 0x20b   : > { %2308 = vmatpush3.bf16.msra.mxu1 %v2305_v39 }
 0x20c   : > { %2310 = vmatprep.subr.bf16.mxu1 %v2309_v42 }
 0x20d   : > { %2229 = vmatmul.mubr.msk.f32.vlgmr.msra.gmra.mrb[10].mxu0 %vm488_vm0, %v680_v36 }
 0x2d9   : > { %v2209_v43 = vpop.f32.mrb[10].mxu1 }
 0x2da   : > { %v1431_v44 = vpop.f32.mrb[11].mxu1 }
 0x2dd   : > { %v2216_v45 = vpop.f32.mrb[12].mxu1 }
 0x2de   : > { %v1522_v46 = vsub.f32 %v2209_v43, %v2216_v45  ;;  %v1512_v47 = vpop.f32.mrb[13].mxu1 }
 0x2df   : > { %v1521_v48 = vsub.f32 %v1431_v44, %v1512_v47 }
 0x2e0   : > { %1524 = vst.msk [vmem:[#allocation2 + $0x8] sm:$0xff] %vm488_vm0, %v1522_v46  ;;  %v2230_v49 = vpop.f32.mrb[10].mxu0 }
 0x2e1   : > { %1523 = vst.msk [vmem:[#allocation2] sm:$0xff] %vm488_vm0, %v1521_v48  ;;  %1676 = vst.msk [vmem:[#allocation3 + $0x8] sm:$0xff] %vm488_vm0, %v2230_v49  ;;  %v1666_v50 = vpop.f32.mrb[11].mxu0 }
 0x2e2   : > { %1675 = vst.msk [vmem:[#allocation3] sm:$0xff] %vm488_vm0, %v1666_v50 }
 0x2e7   : > { %v1678_v52 = vld [vmem:[#allocation2 + $0x8] sm:$0xff] }
 0x2e8   : > { %v1677_v51 = vld [vmem:[#allocation2] sm:$0xff]  ;;  %v1680_v54 = vld [vmem:[#allocation3 + $0x8] sm:$0xff] }
 0x2e9   : > { %2235 = vmatprep.mubr.msk.f32.mxu1 %vm488_vm0, %v1677_v51  ;;  %v1679_v53 = vld [vmem:[#allocation3] sm:$0xff] }
 0x2ea   : > { %2236 = vmatmul.mubr.msk.f32.vlgmr.msra.gmra.mrb[14].mxu1 %vm488_vm0, %v1678_v52 }
 0x2eb   : > { %2312 = vmatpush3.bf16.msra.mxu1 %v2309_v42  ;;  %2242 = vmatprep.mubr.msk.f32.mxu1 %vm488_vm0, %v1679_v53 }
 0x2ee   : > { %2243 = vmatmul.mubr.msk.f32.vlgmr.msra.gmra.mrb[16].mxu1 %vm488_vm0, %v1680_v54 }
 0x3bd   : > { %v2237_v55 = vpop.f32.mrb[14].mxu1 }
 0x3be   : > { %v1755_v56 = vpop.f32.mrb[15].mxu1 }
 0x3c1   : > { %v2244_v57 = vpop.f32.mrb[16].mxu1 }
 0x3c2   : > { %v1848_v58 = vsub.f32 %v2237_v55, %v2244_v57  ;;  %v1838_v59 = vpop.f32.mrb[17].mxu1 }
 0x3c3   : > { %v1847_v60 = vsub.f32 %v1755_v56, %v1838_v59 }
 0x3c4   : > { %v1852_v61 = vsel %vm488_vm0, %v1848_v58, inf  ;;  %v1866_v62 = vsel %vm488_vm0, %v1848_v58, -inf  ;;  %1850 = vst.msk [vmem:[%s473_s26 + $0x8] sm:$0xff] %vm488_vm0, %v1848_v58 }
 0x3c5   : > { %v1851_v63 = vsel %vm488_vm0, %v1847_v60, inf  ;;  %v1865_v0 = vsel %vm488_vm0, %v1847_v60, -inf  ;;  %1849 = vst.msk [vmem:[%s473_s26] sm:$0xff] %vm488_vm0, %v1847_v60 }
 0x3c6   : > { %v1853_v1 = vmin.f32 %v1851_v63, %v1852_v61  ;;  %v1867_v2 = vmax.f32 %v1865_v0, %v1866_v62 }
 0x3c8   : > { %1854 = vmin.xlane.f32.xlu0 %v1853_v1 }
 0x3cc   : > { %1868 = vmax.xlane.f32.xlu0 %v1867_v2 }
 0x455   : > { %v1855_v3 = vpop.xlane.xlu0 %1854 }
 0x456   : > { %v1856_v4 = vrot.slane %v1855_v3, 4 }
 0x458   : > { %v1857_v5 = vmin.f32 %v1855_v3, %v1856_v4 }
 0x459   : > { %v1869_v6 = vpop.xlane.xlu0 %1868 }
 0x45a   : > { %v1858_v7 = vrot.slane %v1857_v5, 2  ;;  %v1870_v8 = vrot.slane %v1869_v6, 4 }
 0x45c   : > { %v1871_v9 = vmax.f32 %v1869_v6, %v1870_v8  ;;  %v1859_v10 = vmin.f32 %v1857_v5, %v1858_v7 }
 0x45e   : > { %v1872_v11 = vrot.slane %v1871_v9, 2  ;;  %v1860_v12 = vrot.slane %v1859_v10, 1 }
 0x460   : > { %v1873_v13 = vmax.f32 %v1871_v9, %v1872_v11  ;;  %v1861_v14 = vmin.f32 %v1859_v10, %v1860_v12 }
 0x462   : > { %2319 = vpush %v1861_v14  ;;  %v1874_v15 = vrot.slane %v1873_v13, 1 }
 0x464   : > { %v1875_v16 = vmax.f32 %v1873_v13, %v1874_v15 }
 0x466   : > { %2321 = vpush %v1875_v16 }
 0x493   : > { %s2320_s13 = spop %2319 }
 0x494   : > { %v1863_v17 = vstv %s2320_s13 }
 0x495   : > { %1864 = vst [vmem:[%s477_s30] sm:$0xff] %v1863_v17 }
 0x497   : > { %s2322_s21 = spop %2321 }
 0x498   : > { %v1877_v18 = vstv %s2322_s21 }
 0x499   : > { %1878 = vst [vmem:[%s481_s16] sm:$0xff] %v1877_v18 }
 0x49a PF: > { %p20_p9 = scmp.ge.s32.totalorder %s2465_s25, 4   ;;  %s2697_s21 = smov %s2377_s22 }
 0x49b   : > { %s2698_s22 = smov %s2474_s28  ;;  %s2699_s23 = smov %s2465_s25 }
 0x49c   :  { %22 = sbr.rel (!%p20_p9) target bundleno = 2 (0x2), region = 157 }

</bundles_post_ra>
